<compile_context>
chip_gen: v6e
topology: v6e:2x2x1
jax: 0.10.0
libtpu: 0.0.40
codegen_flags: <defaults>
</compile_context>

<pallas_src>
import jax
import jax.numpy as jnp
from jax.experimental import pallas as pl
from jax.experimental.pallas import tpu as pltpu  # noqa: F401  (kept for parity / future scaling)


def _sigma_vae_kernel(h_ref, w_ref, b_ref, eps_ref, mulv_ref, z_ref):
    """Single-shot fused encoder projection + reparameterization.

    h_ref    : (N, F)  bf16   flattened input
    w_ref    : (F, 2E) bf16   [W_mu^T | W_var^T] fused along the output dim
    b_ref    : (1, 2E) f32    [b_mu   | b_var]
    eps_ref  : (N, E)  f32    standard-normal noise (zeros => eval mode)
    mulv_ref : (N, 2E) f32    output slab [mu | logvar] (lane-dense, 128 wide)
    z_ref    : (N, E)  f32    reparameterized sample
    """
    # One MXU matmul for both heads, f32 accumulation.
    acc = jnp.dot(h_ref[...], w_ref[...], preferred_element_type=jnp.float32)
    mulv = acc + b_ref[...]                      # bias add in f32
    mulv_ref[...] = mulv                         # unmasked 128-lane store

    E = eps_ref.shape[-1]
    mu = mulv[:, :E]
    logvar = mulv[:, E:]
    z_ref[...] = mu + eps_ref[...] * jnp.exp(0.5 * logvar)


@jax.jit
def sigma_vae_forward(x_nchw, w_mu_t, b_mu, w_var_t, b_var, eps):
    """Returns (z, mu, logvar) for the SigmaVAE forward pass.

    x_nchw : (N, C, H, W) float32
    w_mu_t, w_var_t : (F, E)  -- PyTorch Linear weights already transposed
    b_mu, b_var     : (E,)
    eps             : (N, E)  -- standard-normal noise (zeros => eval mode)
    """
    N = x_nchw.shape[0]
    F = int(x_nchw.shape[1] * x_nchw.shape[2] * x_nchw.shape[3])
    E = w_mu_t.shape[1]

    # Flatten exactly like torch.flatten(start_dim=1); cast matmul operands to
    # bf16 (MXU-native, halves HBM weight traffic). Bias / noise stay f32.
    h = x_nchw.reshape(N, F).astype(jnp.bfloat16)
    w_fused = jnp.concatenate([w_mu_t, w_var_t], axis=1).astype(jnp.bfloat16)   # (F, 2E)
    b_fused = jnp.concatenate([b_mu, b_var], axis=0).reshape(1, 2 * E)          # (1, 2E)
    b_fused = b_fused.astype(jnp.float32)
    eps = eps.astype(jnp.float32)

    # No grid: all operands fit comfortably in VMEM on v5e/v6e/v7x
    # (~256 KiB bf16 weight + <10 KiB activations/outputs), so a single
    # invocation avoids all pipelining / accumulator overhead.
    mulv, z = pl.pallas_call(
        _sigma_vae_kernel,
        out_shape=(
            jax.ShapeDtypeStruct((N, 2 * E), jnp.float32),  # [mu | logvar]
            jax.ShapeDtypeStruct((N, E), jnp.float32),      # z
        ),
    )(h, w_fused, b_fused, eps)

    mu = mulv[:, :E]
    logvar = mulv[:, E:]
    return z, mu, logvar


def _reference_forward(x_nchw, w_mu_t, b_mu, w_var_t, b_var, eps):
    """Pure-JAX reference with the same bf16 operand rounding, f32 accumulation."""
    N = x_nchw.shape[0]
    h = x_nchw.reshape(N, -1).astype(jnp.bfloat16)
    wm = w_mu_t.astype(jnp.bfloat16)
    wv = w_var_t.astype(jnp.bfloat16)
    mu = jnp.dot(h, wm, preferred_element_type=jnp.float32) + b_mu
    logvar = jnp.dot(h, wv, preferred_element_type=jnp.float32) + b_var
    z = mu + eps * jnp.exp(0.5 * logvar)
    return z, mu, logvar


if __name__ == "__main__":
    # obs_space.shape == (C, H, W) == (4, 16, 16); batch N=2; embedding_dim E=64.
    N, C, H, W = 2, 4, 16, 16
    E = 64
    F = C * H * W  # 1024

    key = jax.random.PRNGKey(0)
    kx, kwm, kbm, kwv, kbv, keps = jax.random.split(key, 6)

    x = jax.random.normal(kx, (N, C, H, W), dtype=jnp.float32)

    # Deterministic init mimicking nn.Linear default: U(-1/sqrt(F), 1/sqrt(F)).
    bound = 1.0 / jnp.sqrt(jnp.float32(F))
    w_mu_t = jax.random.uniform(kwm, (F, E), jnp.float32, -bound, bound)
    b_mu = jax.random.uniform(kbm, (E,), jnp.float32, -bound, bound)
    w_var_t = jax.random.uniform(kwv, (F, E), jnp.float32, -bound, bound)
    b_var = jax.random.uniform(kbv, (E,), jnp.float32, -bound, bound)

    # Training-mode reparameterization noise (set to zeros for eval mode z == mu).
    eps = jax.random.normal(keps, (N, E), dtype=jnp.float32)

    z, mu, logvar = sigma_vae_forward(x, w_mu_t, b_mu, w_var_t, b_var, eps)
    jax.block_until_ready((z, mu, logvar))

    z_ref, mu_ref, logvar_ref = _reference_forward(x, w_mu_t, b_mu, w_var_t, b_var, eps)
    assert jnp.allclose(mu, mu_ref, atol=1e-3, rtol=1e-3)
    assert jnp.allclose(logvar, logvar_ref, atol=1e-3, rtol=1e-3)
    assert jnp.allclose(z, z_ref, atol=1e-3, rtol=1e-3)

    print("KERNEL_OK")
</pallas_src>

<mosaic_0001>
module attributes {stable_mosaic.version = 11 : i64} {
  func.func @_sigma_vae_kernel(%arg0: memref<2x1024xbf16, #tpu.memory_space<vmem>>, %arg1: memref<1024x128xbf16, #tpu.memory_space<vmem>>, %arg2: memref<1x128xf32, #tpu.memory_space<vmem>>, %arg3: memref<2x64xf32, #tpu.memory_space<vmem>>, %arg4: memref<2x128xf32, #tpu.memory_space<vmem>>, %arg5: memref<2x64xf32, #tpu.memory_space<vmem>>) attributes {dimension_semantics = [], scalar_prefetch = 0 : i64, scratch_operands = 0 : i64, tpu.core_type = #tpu.core_type<tc>} {
    %c0 = arith.constant 0 : index
    %c0_0 = arith.constant 0 : index
    %0 = vector.load %arg0[%c0, %c0_0] : memref<2x1024xbf16, #tpu.memory_space<vmem>>, vector<2x1024xbf16>
    %c0_1 = arith.constant 0 : index
    %c0_2 = arith.constant 0 : index
    %1 = vector.load %arg1[%c0_1, %c0_2] : memref<1024x128xbf16, #tpu.memory_space<vmem>>, vector<1024x128xbf16>
    %cst = arith.constant dense<0.000000e+00> : vector<2x128xf32>
    %2 = tpu.matmul %0, %1, %cst {dimension_numbers = #tpu.dot_dimension_numbers<[1], [0], [0], [1], [0, 0, 1, 1], [], []>} : vector<2x1024xbf16>, vector<1024x128xbf16>, vector<2x128xf32> -> vector<2x128xf32>
    %c0_3 = arith.constant 0 : index
    %c0_4 = arith.constant 0 : index
    %3 = vector.load %arg2[%c0_3, %c0_4] : memref<1x128xf32, #tpu.memory_space<vmem>>, vector<1x128xf32>
    %4 = vector.broadcast %3 : vector<1x128xf32> to vector<2x128xf32>
    %5 = arith.addf %2, %4 : vector<2x128xf32>
    %c0_5 = arith.constant 0 : index
    %c0_6 = arith.constant 0 : index
    %6 = vector.load %arg4[%c0_5, %c0_6] : memref<2x128xf32, #tpu.memory_space<vmem>>, vector<2x128xf32>
    tpu.vector_store %arg4[%c0_5, %c0_6], %5 {strides = array<i32>} : memref<2x128xf32, #tpu.memory_space<vmem>>, vector<2x128xf32>,
    %7 = vector.extract_strided_slice %5 {offsets = [0, 0], sizes = [2, 64], strides = [1, 1]} : vector<2x128xf32> to vector<2x64xf32>
    %8 = vector.extract_strided_slice %5 {offsets = [0, 64], sizes = [2, 64], strides = [1, 1]} : vector<2x128xf32> to vector<2x64xf32>
    %c0_7 = arith.constant 0 : index
    %c0_8 = arith.constant 0 : index
    %9 = vector.load %arg3[%c0_7, %c0_8] : memref<2x64xf32, #tpu.memory_space<vmem>>, vector<2x64xf32>
    %cst_9 = arith.constant 5.000000e-01 : f32
    %10 = vector.broadcast %cst_9 : f32 to vector<2x64xf32>
    %11 = arith.mulf %10, %8 : vector<2x64xf32>
    %12 = math.exp %11 : vector<2x64xf32>
    %13 = arith.mulf %9, %12 : vector<2x64xf32>
    %14 = arith.addf %7, %13 : vector<2x64xf32>
    %c0_10 = arith.constant 0 : index
    %c0_11 = arith.constant 0 : index
    %15 = vector.load %arg5[%c0_10, %c0_11] : memref<2x64xf32, #tpu.memory_space<vmem>>, vector<2x64xf32>
    tpu.vector_store %arg5[%c0_10, %c0_11], %14 {strides = array<i32>} : memref<2x64xf32, #tpu.memory_space<vmem>>, vector<2x64xf32>,
    return
  }
}

</mosaic_0001>

<bundles_post_ra>
// kernel: sigma_vae_forward.1
= control target key start
LH: loop header
LB: loop body
LE: loop exit
PB: predicated region body
PF: predicated region fallthrough
CT: control target
= control target key end

     0   :  { %v162_v28 = vlaneseq  ;;  %v1035_v36 = vmov 1966171168   ;;  %s1288_s0 = inlined_call_operand.vmem [shape: bf16[2,1024], index: 0, kind: input, shape index: {}]   ;;  %s1289_s1 = inlined_call_operand.vmem [shape: bf16[1024,128], index: 1, kind: input, shape index: {}]   ;;  %s1290_s2 = inlined_call_operand.vmem [shape: f32[1,128], index: 2, kind: input, shape index: {}]   ;;  %s1291_s3 = inlined_call_operand.vmem [shape: f32[2,64], index: 3, kind: input, shape index: {}]   ;;  %s1292_s4 = inlined_call_operand.vmem [shape: f32[2,128], index: 4, kind: output, shape index: {0}]   ;;  %s1293_s5 = inlined_call_operand.hbm [shape: f32[2,64], index: 5, kind: output, shape index: {1}]  }
   0x1   :  { %v946_v0 = vld [vmem:[%s1289_s1 + $0x78] sm:$0xff]   ;;  %v950_v4 = vld [vmem:[%s1289_s1 + $0x70] sm:$0xff]   ;;  %v954_v8 = vld [vmem:[%s1289_s1 + $0x68] sm:$0xff]   ;;  %v160_v37 = vunpack.c.l.s4 %v1035_v36 }
   0x2   :  { %v947_v1 = vld [vmem:[%s1289_s1 + $0xf8] sm:$0xff]   ;;  %855 = vmatprep.subr.bf16.mxu0 %v946_v0  ;;  %v951_v5 = vld [vmem:[%s1289_s1 + $0xf0] sm:$0xff]   ;;  %v955_v9 = vld [vmem:[%s1289_s1 + $0xe8] sm:$0xff]   ;;  %v163_v33 = vshrl.u32 %v162_v28, 7 }
   0x3   :  { %v948_v2 = vld [vmem:[%s1289_s1 + $0x38] sm:$0xff]   ;;  %877 = vmatprep.subr.bf16.mxu1 %v947_v1  ;;  %v952_v6 = vld [vmem:[%s1289_s1 + $0x30] sm:$0xff]   ;;  %v956_v10 = vld [vmem:[%s1289_s1 + $0x28] sm:$0xff]   ;;  %v161_v40 = vunpack.c.0.s8 %v160_v37 }
   0x4   :  { %v949_v3 = vld [vmem:[%s1289_s1 + $0xb8] sm:$0xff]   ;;  %856 = vmatpush3.bf16.msra.mxu0 %v948_v2  ;;  %v953_v7 = vld [vmem:[%s1289_s1 + $0xb0] sm:$0xff]   ;;  %v957_v11 = vld [vmem:[%s1289_s1 + $0xa8] sm:$0xff]  }
   0x5   :  { %878 = vmatpush3.bf16.msra.mxu1 %v949_v3  ;;  %857 = vmatprep.subr.bf16.mxu0 %v950_v4  ;;  %v958_v12 = vld [vmem:[%s1289_s1 + $0x60] sm:$0xff]   ;;  %v962_v16 = vld [vmem:[%s1289_s1 + $0x58] sm:$0xff]   ;;  %v966_v20 = vld [vmem:[%s1289_s1 + $0x50] sm:$0xff]   ;;  %v1173_v41 = vsub.s32 %v161_v40, %v163_v33 }
   0x6   :  { %879 = vmatprep.subr.bf16.mxu1 %v951_v5  ;;  %v959_v13 = vld [vmem:[%s1289_s1 + $0xe0] sm:$0xff]   ;;  %v963_v17 = vld [vmem:[%s1289_s1 + $0xd8] sm:$0xff]   ;;  %v967_v21 = vld [vmem:[%s1289_s1 + $0xd0] sm:$0xff]  }
   0x7   :  { %v960_v14 = vld [vmem:[%s1289_s1 + $0x20] sm:$0xff]   ;;  %v964_v18 = vld [vmem:[%s1289_s1 + $0x18] sm:$0xff]   ;;  %v968_v22 = vld [vmem:[%s1289_s1 + $0x10] sm:$0xff]  }
   0x8   :  { %858 = vmatpush3.bf16.msra.mxu0 %v952_v6  ;;  %v961_v15 = vld [vmem:[%s1289_s1 + $0xa0] sm:$0xff]   ;;  %v965_v19 = vld [vmem:[%s1289_s1 + $0x98] sm:$0xff]   ;;  %v969_v23 = vld [vmem:[%s1289_s1 + $0x90] sm:$0xff]  }
   0x9   :  { %880 = vmatpush3.bf16.msra.mxu1 %v953_v7  ;;  %859 = vmatprep.subr.bf16.mxu0 %v954_v8  ;;  %v970_v24 = vld [vmem:[%s1289_s1 + $0x48] sm:$0xff]   ;;  %v974_v29 = vld [vmem:[%s1289_s1 + $0x40] sm:$0xff]   ;;  %v979_v35 = vld [vmem:[%s1289_s1 + $0x178] sm:$0xff]  }
   0xa   :  { %881 = vmatprep.subr.bf16.mxu1 %v955_v9  ;;  %v971_v25 = vld [vmem:[%s1289_s1 + $0xc8] sm:$0xff]   ;;  %v975_v30 = vld [vmem:[%s1289_s1 + $0xc0] sm:$0xff]   ;;  %v980_v38 = vld [vmem:[%s1289_s1 + $0x1f8] sm:$0xff]  }
   0xb   :  { %v972_v26 = vld [vmem:[%s1289_s1 + $0x8] sm:$0xff]   ;;  %v976_v31 = vld [vmem:[%s1289_s1] sm:$0xff]   ;;  %v981_v48 = vld [vmem:[%s1289_s1 + $0x138] sm:$0xff]  }
   0xc   :  { %860 = vmatpush3.bf16.msra.mxu0 %v956_v10  ;;  %v973_v27 = vld [vmem:[%s1289_s1 + $0x88] sm:$0xff]   ;;  %v977_v32 = vld [vmem:[%s1289_s1 + $0x80] sm:$0xff]   ;;  %v983_v51 = vld [vmem:[%s1289_s1 + $0x170] sm:$0xff]  }
   0xd   :  { %882 = vmatpush3.bf16.msra.mxu1 %v957_v11  ;;  %861 = vmatprep.subr.bf16.mxu0 %v958_v12  ;;  %v21_v34 = vld [vmem:[%s1288_s0] sm:$0xff]  ;;  %v982_v53 = vld [vmem:[%s1289_s1 + $0x1b8] sm:$0xff]   ;;  %v984_v54 = vld [vmem:[%s1289_s1 + $0x1f0] sm:$0xff]  }
   0xe   :  { %883 = vmatprep.subr.bf16.mxu1 %v959_v13  ;;  %v158_v39 = vcombine.high %v21_v34, %v21_v34  ;;  %v165_v42 = vrot.slane %v21_v34, %v1173_v41  ;;  %v985_v56 = vld [vmem:[%s1289_s1 + $0x130] sm:$0xff]   ;;  %v987_v57 = vld [vmem:[%s1289_s1 + $0x168] sm:$0xff]   ;;  %v991_v61 = vld [vmem:[%s1289_s1 + $0x160] sm:$0xff]  }
   0xf   :  { %v986_v58 = vld [vmem:[%s1289_s1 + $0x1b0] sm:$0xff]   ;;  %v988_v59 = vld [vmem:[%s1289_s1 + $0x1e8] sm:$0xff]   ;;  %v992_v63 = vld [vmem:[%s1289_s1 + $0x1e0] sm:$0xff]  }
  0x10   :  { %862 = vmatpush3.bf16.msra.mxu0 %v960_v14  ;;  %v1177_v43 = vrot.slane %v158_v39, %v1173_v41  ;;  %v173_v44 = vcombine.high %v165_v42, %v165_v42  ;;  %v181_v45 = vrot.slane %v165_v42, %v1173_v41  ;;  %v989_v60 = vld [vmem:[%s1289_s1 + $0x128] sm:$0xff]   ;;  %v993_v0 = vld [vmem:[%s1289_s1 + $0x120] sm:$0xff]   ;;  %v995_v1 = vld [vmem:[%s1289_s1 + $0x158] sm:$0xff]  }
  0x11   :  { %884 = vmatpush3.bf16.msra.mxu1 %v961_v15  ;;  %863 = vmatprep.subr.bf16.mxu0 %v962_v16  ;;  %v990_v62 = vld [vmem:[%s1289_s1 + $0x1a8] sm:$0xff]   ;;  %v994_v2 = vld [vmem:[%s1289_s1 + $0x1a0] sm:$0xff]   ;;  %v996_v3 = vld [vmem:[%s1289_s1 + $0x1d8] sm:$0xff]  }
  0x12   :  { %885 = vmatprep.subr.bf16.mxu1 %v963_v17  ;;  %v174_v46 = vcombine.high %v1177_v43, %v1177_v43  ;;  %v195_v47 = vrot.slane %v173_v44, %v1173_v41  ;;  %v203_v50 = vcombine.high %v181_v45, %v181_v45  ;;  %v997_v4 = vld [vmem:[%s1289_s1 + $0x118] sm:$0xff]   ;;  %v999_v5 = vld [vmem:[%s1289_s1 + $0x150] sm:$0xff]   ;;  %v1003_v9 = vld [vmem:[%s1289_s1 + $0x148] sm:$0xff]  }
  0x13   :  { %v998_v6 = vld [vmem:[%s1289_s1 + $0x198] sm:$0xff]   ;;  %v1000_v7 = vld [vmem:[%s1289_s1 + $0x1d0] sm:$0xff]  }
  0x14   :  { %864 = vmatpush3.bf16.msra.mxu0 %v964_v18  ;;  %v202_v49 = vrot.slane %v174_v46, %v1173_v41  ;;  %631 = vmatprep.mubr.bf16.mxu0 %v195_v47  ;;  %v205_v52 = vcombine.high %v195_v47, %v195_v47  ;;  %v1001_v8 = vld [vmem:[%s1289_s1 + $0x110] sm:$0xff]  }
  0x15   :  { %886 = vmatpush3.bf16.msra.mxu1 %v965_v19  ;;  %865 = vmatprep.subr.bf16.mxu0 %v966_v20 }
  0x16   :  { %887 = vmatprep.subr.bf16.mxu1 %v967_v21  ;;  %v206_v55 = vcombine.high %v202_v49, %v202_v49  ;;  %671 = vmatprep.mubr.bf16.mxu1 %v205_v52 }
  0x18   :  { %866 = vmatpush3.bf16.msra.mxu0 %v968_v22 }
  0x19   :  { %888 = vmatpush3.bf16.msra.mxu1 %v969_v23  ;;  %867 = vmatprep.subr.bf16.mxu0 %v970_v24 }
  0x1a   :  { %889 = vmatprep.subr.bf16.mxu1 %v971_v25 }
  0x1c   :  { %868 = vmatpush3.bf16.msra.mxu0 %v972_v26 }
  0x1d   :  { %890 = vmatpush3.bf16.msra.mxu1 %v973_v27  ;;  %869 = vmatprep.subr.bf16.mxu0 %v974_v29 }
  0x1e   :  { %891 = vmatprep.subr.bf16.mxu1 %v975_v30 }
  0x20   :  { %870 = vmatpush3.bf16.msra.mxu0 %v976_v31 }
  0x21   :  { %892 = vmatpush3.bf16.msra.mxu1 %v977_v32  ;;  %899 = vmatprep.subr.bf16.mxu0 %v979_v35 }
  0x22   :  { %921 = vmatprep.subr.bf16.mxu1 %v980_v38 }
  0x23   :  { %632 = vmatmul.mubr.bf16.vlgmr.msra.gmra.mxu0 %v181_v45 }
  0x24   :  { %900 = vmatpush3.bf16.msra.mxu0 %v981_v48  ;;  %672 = vmatmul.mubr.bf16.vlgmr.msra.gmra.mxu1 %v203_v50 }
  0x25   :  { %901 = vmatprep.subr.bf16.mxu0 %v983_v51  ;;  %922 = vmatpush3.bf16.msra.mxu1 %v982_v53 }
  0x26   :  { %711 = vmatprep.mubr.bf16.mxu0 %v202_v49  ;;  %923 = vmatprep.subr.bf16.mxu1 %v984_v54 }
  0x27   :  { %751 = vmatprep.mubr.bf16.mxu1 %v206_v55 }
  0x28   :  { %902 = vmatpush3.bf16.msra.mxu0 %v985_v56 }
  0x29   :  { %903 = vmatprep.subr.bf16.mxu0 %v987_v57  ;;  %924 = vmatpush3.bf16.msra.mxu1 %v986_v58 }
  0x2a   :  { %925 = vmatprep.subr.bf16.mxu1 %v988_v59 }
  0x2c   :  { %904 = vmatpush3.bf16.msra.mxu0 %v989_v60 }
  0x2d   :  { %905 = vmatprep.subr.bf16.mxu0 %v991_v61  ;;  %926 = vmatpush3.bf16.msra.mxu1 %v990_v62 }
  0x2e   :  { %927 = vmatprep.subr.bf16.mxu1 %v992_v63 }
  0x30   :  { %906 = vmatpush3.bf16.msra.mxu0 %v993_v0 }
  0x31   :  { %907 = vmatprep.subr.bf16.mxu0 %v995_v1  ;;  %928 = vmatpush3.bf16.msra.mxu1 %v994_v2 }
  0x32   :  { %929 = vmatprep.subr.bf16.mxu1 %v996_v3 }
  0x34   :  { %908 = vmatpush3.bf16.msra.mxu0 %v997_v4 }
  0x35   :  { %909 = vmatprep.subr.bf16.mxu0 %v999_v5 }
  0x36   :  { %11 = vsyncpa [#allocation3], 0  ;;  %930 = vmatpush3.bf16.msra.mxu1 %v998_v6  ;;  %v1002_v10 = vld [vmem:[%s1289_s1 + $0x190] sm:$0xff]   ;;  %v1004_v11 = vld [vmem:[%s1289_s1 + $0x1c8] sm:$0xff]   ;;  %v188_v17 = vrot.slane %v1177_v43, %v1173_v41  ;;  %s1037_s25 = smov [#allocation2]   ;;  %vm770_vm0 = vcmask 517120  }
  0x37   :  { %931 = vmatprep.subr.bf16.mxu1 %v1000_v7  ;;  %v1005_v12 = vld [vmem:[%s1289_s1 + $0x108] sm:$0xff]   ;;  %v1007_v13 = vld [vmem:[%s1289_s1 + $0x140] sm:$0xff]   ;;  %s780_s26 = sshll.u32 %s1037_s25, 4  ;;  %s781_s26 = int_to_ptr.vmem [resolvable:$true] %s780_s26 }
  0x38   :  { %910 = vmatpush3.bf16.msra.mxu0 %v1001_v8  ;;  %v1006_v14 = vld [vmem:[%s1289_s1 + $0x188] sm:$0xff]   ;;  %v1008_v15 = vld [vmem:[%s1289_s1 + $0x1c0] sm:$0xff]   ;;  %v204_v19 = vcombine.high %v188_v17, %v188_v17  ;;  %s1013_s27 = scalar_lea.vmem %s781_s26, 32  ;;  %p1018_p1 = scmp.lt.s32.totalorder %s781_s26, %s781_s26 }
  0x39   :  { %911 = vmatprep.subr.bf16.mxu0 %v1003_v9  ;;  %v1009_v16 = vld [vmem:[%s1289_s1 + $0x100] sm:$0xff]   ;;  %p1014_p0 = scmp.ne.s32.totalorder %s781_s26, %s1013_s27  ;;  %p1019_p2 = scmp.lt.s32.totalorder %s1013_s27, %s1013_s27 }
  0x3a   :  { %932 = vmatpush3.bf16.msra.mxu1 %v1002_v10  ;;  %v1010_v18 = vld [vmem:[%s1289_s1 + $0x180] sm:$0xff]  }
  0x3b   :  { %933 = vmatprep.subr.bf16.mxu1 %v1004_v11  ;;  %v790_v29 = vld [vmem:[%s1290_s2] ss:$0 sm:$0xff]  ;;  %s1036_s2 = smov 64   ;;  %p1020_p3 = por %p1019_p2, %p1018_p1 }
  0x3c   :  { %912 = vmatpush3.bf16.msra.mxu0 %v1005_v12  ;;  %v760_v48 = vld [vmem:[%s1291_s3] sm:$0x3] }
  0x3d   :  { %913 = vmatprep.subr.bf16.mxu0 %v1007_v13  ;;  %p1021_p4 = pnand %p1020_p3, %p1014_p0 }
  0x3e   :  { %934 = vmatpush3.bf16.msra.mxu1 %v1006_v14 }
  0x3f   :  { %935 = vmatprep.subr.bf16.mxu1 %v1008_v15 }
  0x40   :  { %914 = vmatpush3.bf16.msra.mxu0 %v1009_v16 }
  0x42   :  { %936 = vmatpush3.bf16.msra.mxu1 %v1010_v18 }
  0x43   :  { %712 = vmatmul.mubr.bf16.vlgmr.msra.gmra.mxu0 %v188_v17 }
  0x45   :  { %752 = vmatmul.mubr.bf16.vlgmr.msra.gmra.mxu1 %v204_v19 }
  0xe3   :  { %v871_v20 = vpop.f32.mrf.mxu0 }
  0xe4   :  { %v893_v21 = vpop.f32.mrf.mxu1 }
  0xe5   :  { %v872_v22 = vpop.f32.mrf.mxu0 }
  0xe6   :  { %v894_v23 = vpop.f32.mrf.mxu1  ;;  %v873_v28 = vadd.f32 %v872_v22, %v871_v20 }
  0xe7   :  { %v874_v24 = vpop.f32.mrf.mxu0  ;;  %v895_v31 = vadd.f32 %v894_v23, %v893_v21 }
  0xe8   :  { %v896_v25 = vpop.f32.mrf.mxu1  ;;  %v634_v30 = vadd.f32 %v873_v28, %v790_v29 }
  0xe9   :  { %v875_v26 = vpop.f32.mrf.mxu0 }
  0xea   :  { %v897_v27 = vpop.f32.mrf.mxu1  ;;  %v674_v35 = vadd.f32 %v895_v31, %v634_v30 }
 0x103   :  { %v915_v32 = vpop.f32.mrf.mxu0 }
 0x105   :  { %v937_v33 = vpop.f32.mrf.mxu1  ;;  %v916_v34 = vpop.f32.mrf.mxu0 }
 0x106   :  { %v917_v36 = vadd.f32 %v916_v34, %v915_v32 }
 0x107   :  { %v938_v37 = vpop.f32.mrf.mxu1  ;;  %v918_v38 = vpop.f32.mrf.mxu0 }
 0x108   :  { %v714_v39 = vadd.f32 %v917_v36, %v674_v35  ;;  %v939_v40 = vadd.f32 %v938_v37, %v937_v33 }
 0x109   :  { %v940_v41 = vpop.f32.mrf.mxu1  ;;  %v919_v42 = vpop.f32.mrf.mxu0 }
 0x10a   :  { %v754_v43 = vadd.f32 %v939_v40, %v714_v39 }
 0x10b   :  { %v941_v44 = vpop.f32.mrf.mxu1 }
 0x10c   :  { %759 = vst [vmem:[%s1292_s4] sm:$0x3] %v754_v43  ;;  %v761_v45 = vmul.f32 0.5, %v754_v43 }
 0x10e   :  { %v762_v46 = vmul.f32 1.442695, %v761_v45 }
 0x110   :  { %1011 = vpow2.f32 %v762_v46 }
 0x11d   :  { %v1012_v47 = vpop.eup %1011 }
 0x11e   :  { %765 = vrot.lane.b32.xlu0 %v1012_v47, %s1036_s2 }
 0x190   :  { %v766_v49 = vpop.permute.xlu0 %765 }
 0x191   :  { %v768_v50 = vmul.f32 %v766_v49, %v760_v48 }
 0x193   :  { %v769_v51 = vadd.f32 %v768_v50, %v754_v43 }
 0x195   :  { %771 = vst.msk [vmem:[#allocation2] sm:$0x3] %vm770_vm0, %v769_v51 }
 0x196   :  { %1024 = shalt.err (!%p1021_p4)
}
 0x197   :  { %783 = dma.vmem_to_hbm [thread:$0]  %s781_s26, 32, %s1293_s5, [#allocation3]  }
 0x198   :  { %1033 = dma.done.wait [#allocation3], 32  }
 0x199   :  { %1034 = vsyncadd [#allocation3], 4294967264 }
 0x19a   :  { %789 = vsyncpa [#allocation3], 1 }

</bundles_post_ra>
